<compile_context>
chip_gen: v6e
topology: v6e:2x2x1
jax: 0.10.0
libtpu: 0.0.40
codegen_flags: <defaults>
</compile_context>

<pallas_src>
import functools

import jax
import jax.numpy as jnp
from jax.experimental import pallas as pl
from jax.experimental.pallas import tpu as pltpu


def _round_up(x: int, m: int) -> int:
    return (x + m - 1) // m * m


def _vmem_capacity_bytes() -> int:
    """Physical VMEM per TensorCore; conservative (v7x = 64 MiB) fallback."""
    try:
        return int(pltpu.get_tpu_info().vmem_capacity_bytes)
    except Exception:
        return 64 << 20


def _pick_tm(M: int) -> int:
    """Row tile: >=4 parallel blocks when M is large (keeps both v7x TCs fed,
    load-balances the padded tail), capped at 512 rows (single-TC v5e/v6e
    HBM-roofline sweet spot), always a multiple of 8 sublanes."""
    if M <= 64:
        return _round_up(max(M, 1), 8)
    return max(8, min(512, _round_up((M + 3) // 4, 8)))


# ----------------------------- fused kernel -------------------------------- #
def _mlp_fused_kernel(*refs, num_layers, sigmoid_output):
    """refs = (x, w0, b0, ..., w{L-1}, b{L-1}, out).

    x   : (tm, D0)        activations for this row tile
    w_l : (D_l, D_{l+1})  pre-transposed (in, out), resident in VMEM
    b_l : (1, D_{l+1})
    out : (tm, D_L)
    """
    x_ref = refs[0]
    o_ref = refs[-1]
    wb = refs[1:-1]

    y = x_ref[...].astype(jnp.float32)
    for l in range(num_layers):
        w = wb[2 * l][...]
        b = wb[2 * l + 1][...]
        # MXU matmul with f32 accumulation; cast activations to the weight
        # dtype so bf16 params hit the full-rate MXU path on v6e/v7x.
        acc = jnp.dot(y.astype(w.dtype), w, preferred_element_type=jnp.float32)
        acc = acc + b.astype(jnp.float32)
        y = jnp.maximum(acc, 0.0) if l < num_layers - 1 else acc
    if sigmoid_output:
        # exp on the EUP + approximate reciprocal (also EUP): no VPU divide.
        # Epilogue stays f32 (v5e has no bf16 VPU/EUP path).
        y = pl.reciprocal(1.0 + jnp.exp(-y), approx=True)
    o_ref[...] = y.astype(o_ref.dtype)


# ------------------------- tiled per-layer fallback ------------------------- #
def _linear_tiled_kernel(x_ref, w_ref, b_ref, o_ref, acc_ref, *, relu, sigmoid):
    k = pl.program_id(2)

    @pl.when(k == 0)
    def _():
        acc_ref[...] = jnp.zeros_like(acc_ref)

    acc_ref[...] += jnp.dot(x_ref[...].astype(w_ref.dtype), w_ref[...],
                            preferred_element_type=jnp.float32)

    @pl.when(k == pl.num_programs(2) - 1)
    def _():
        y = acc_ref[...] + b_ref[...].astype(jnp.float32)
        if relu:
            y = jnp.maximum(y, 0.0)
        if sigmoid:
            y = pl.reciprocal(1.0 + jnp.exp(-y), approx=True)
        o_ref[...] = y.astype(o_ref.dtype)


def _linear_tiled(x2, wt, b2, *, relu, sigmoid, out_dtype,
                  tm=256, tn=256, tk=256):
    """One Linear(+activation) with a K-reduction grid and an f32 VMEM
    accumulator.  Fallback for weights too large to keep resident (v7x)."""
    M, K = x2.shape
    _, N = wt.shape
    tm = min(tm, _round_up(max(M, 1), 8))
    tk = min(tk, _round_up(K, 128))
    tn = min(tn, _round_up(N, 128))
    m_pad, k_pad, n_pad = _round_up(M, tm), _round_up(K, tk), _round_up(N, tn)

    xp = x2 if (m_pad, k_pad) == (M, K) else jnp.pad(
        x2, ((0, m_pad - M), (0, k_pad - K)))
    wp = wt if (k_pad, n_pad) == (K, N) else jnp.pad(
        wt, ((0, k_pad - K), (0, n_pad - N)))
    bp = b2 if n_pad == N else jnp.pad(b2, ((0, 0), (0, n_pad - N)))

    out = pl.pallas_call(
        functools.partial(_linear_tiled_kernel, relu=relu, sigmoid=sigmoid),
        out_shape=jax.ShapeDtypeStruct((m_pad, n_pad), out_dtype),
        grid=(m_pad // tm, n_pad // tn, k_pad // tk),
        in_specs=[
            pl.BlockSpec((tm, tk), lambda i, j, k: (i, k)),
            pl.BlockSpec((tk, tn), lambda i, j, k: (k, j)),
            pl.BlockSpec((1, tn), lambda i, j, k: (0, j)),
        ],
        out_specs=pl.BlockSpec((tm, tn), lambda i, j, k: (i, j)),
        scratch_shapes=[pltpu.VMEM((tm, tn), jnp.float32)],
        compiler_params=pltpu.CompilerParams(
            dimension_semantics=("parallel", "parallel", "arbitrary")),
    )(xp, wp, bp)
    return out[:M, :N]


# ------------------------------- param prep -------------------------------- #
def prepare_params(params, param_dtype=None):
    """One-time preprocessing (hoisted out of the forward path).

    Transposes each PyTorch-layout weight (out, in) -> (in, out) so the kernel
    does `x @ W` directly on the MXU, reshapes biases to (1, out), and
    optionally casts weights to bf16 (full-rate MXU + half resident VMEM on
    v6e/v7x).  Biases keep their dtype; the epilogue adds them in f32.
    """
    prepped = []
    for w, b in params:
        wt = jnp.asarray(w).T
        if param_dtype is not None:
            wt = wt.astype(param_dtype)
        prepped.append((wt, jnp.asarray(b).reshape(1, -1)))
    return prepped


def _resident_spec(shape, single_buffer):
    index_map = lambda i: (0,) * len(shape)
    if single_buffer:
        # Constant index_map -> the block never changes; a single buffer halves
        # resident-weight VMEM vs. the default double buffering.
        try:
            return pl.BlockSpec(shape, index_map, pipeline_mode=pl.Buffered(1))
        except TypeError:
            pass
    return pl.BlockSpec(shape, index_map)


# --------------------------------- forward ---------------------------------- #
def mlp2_forward(x, prepared_params, *, sigmoid_output=False, tm=None,
                 force_tiled=False):
    """Pallas forward of MLP2.  `prepared_params` comes from prepare_params()."""
    num_layers = len(prepared_params)
    lead_shape = x.shape[:-1]
    d_in = x.shape[-1]
    assert prepared_params[0][0].shape[0] == d_in, "input_dim mismatch"
    d_out = prepared_params[-1][0].shape[1]

    M = 1
    for d in lead_shape:
        M *= d
    x2 = x.reshape(M, d_in)

    x_item = jnp.dtype(x.dtype).itemsize
    if tm is None:
        tm = _pick_tm(M)
    m_pad = _round_up(max(M, 1), tm)

    # VMEM budget: per-array itemsize, residents single-buffered, x/out blocks
    # double-buffered, plus f32 inter-layer activation working set.
    resident_bytes = sum(w.size * w.dtype.itemsize + b.size * b.dtype.itemsize
                         for w, b in prepared_params)
    io_block_bytes = tm * d_in * x_item + tm * d_out * x_item
    max_width = max([d_in] + [w.shape[1] for w, _ in prepared_params])
    act_bytes = 4 * tm * max_width
    est_vmem = resident_bytes + 2 * io_block_bytes + act_bytes

    vmem_cap = _vmem_capacity_bytes()
    fused_budget = max(32 << 20, vmem_cap - (24 << 20))   # ~40 MiB on v7x

    if force_tiled or est_vmem > fused_budget:
        # Weights don't fit resident: stream them layer-by-layer with a
        # K/N-tiled reduction grid (activations round-trip HBM between layers).
        y2 = x2
        for l, (wt, b2) in enumerate(prepared_params):
            last = l == num_layers - 1
            y2 = _linear_tiled(y2, wt, b2, relu=not last,
                               sigmoid=last and sigmoid_output,
                               out_dtype=x.dtype)
        return y2.reshape(*lead_shape, d_out)

    # Fused path: all layers in one pallas_call, weights resident in VMEM,
    # intermediate activations never touch HBM.  Only the row axis is padded.
    x_pad = x2 if m_pad == M else jnp.pad(x2, ((0, m_pad - M), (0, 0)))
    flat_inputs = [x_pad]
    for wt, b2 in prepared_params:
        flat_inputs += [wt, b2]

    flops = 2 * m_pad * sum(w.shape[0] * w.shape[1] for w, _ in prepared_params)
    cost = pl.CostEstimate(
        flops=flops,
        transcendentals=m_pad * d_out if sigmoid_output else 0,
        bytes_accessed=(m_pad * d_in * x_item + resident_bytes
                        + m_pad * d_out * x_item))
    vmem_limit = int(min(max(int(est_vmem * 1.5) + (4 << 20), 32 << 20),
                         vmem_cap - (8 << 20)))
    kernel = functools.partial(_mlp_fused_kernel, num_layers=num_layers,
                               sigmoid_output=sigmoid_output)

    def run(single_buffer_residents):
        in_specs = [pl.BlockSpec((tm, d_in), lambda i: (i, 0))]
        for wt, b2 in prepared_params:
            in_specs.append(_resident_spec(wt.shape, single_buffer_residents))
            in_specs.append(_resident_spec(b2.shape, single_buffer_residents))
        return pl.pallas_call(
            kernel,
            out_shape=jax.ShapeDtypeStruct((m_pad, d_out), x.dtype),
            grid=(m_pad // tm,),
            in_specs=in_specs,
            out_specs=pl.BlockSpec((tm, d_out), lambda i: (i, 0)),
            compiler_params=pltpu.CompilerParams(
                dimension_semantics=("parallel",),
                vmem_limit_bytes=vmem_limit),
            cost_estimate=cost,
        )(*flat_inputs)

    try:
        y_pad = run(True)
    except Exception:
        # If this Pallas build rejects Buffered(1), retry with default
        # double-buffered resident blocks (same semantics, 2x resident VMEM).
        y_pad = run(False)

    return y_pad[:M].reshape(*lead_shape, d_out)


# ----------------------------- params / reference --------------------------- #
def init_mlp2_params(key, input_dim, hidden_dim, output_dim, num_layers,
                     dtype=jnp.float32):
    """PyTorch nn.Linear-style init: U(+-1/sqrt(fan_in)); weights in (out, in)."""
    h = [hidden_dim] * (num_layers - 1)
    params = []
    for n_in, n_out in zip([input_dim] + h, h + [output_dim]):
        key, kw, kb = jax.random.split(key, 3)
        bound = 1.0 / (n_in ** 0.5)
        w = jax.random.uniform(kw, (n_out, n_in), dtype, -bound, bound)
        b = jax.random.uniform(kb, (n_out,), dtype, -bound, bound)
        params.append((w, b))
    return params


def mlp2_reference(x, params, *, sigmoid_output=False):
    y = x
    for i, (w, b) in enumerate(params):
        y = y @ w.T + b
        if i < len(params) - 1:
            y = jax.nn.relu(y)
    return jax.nn.sigmoid(y) if sigmoid_output else y


# ----------------------------------- main ----------------------------------- #
if __name__ == "__main__":
    key = jax.random.PRNGKey(0)
    k_x, k_p = jax.random.split(key)

    input_dim, hidden_dim, output_dim, num_layers = 32, 32, 16, 3
    # (batch=2, tokens=100): exercises row padding (200 -> 224) and a 4-block
    # "parallel" row grid at tm=56.
    x = jax.random.normal(k_x, (2, 100, input_dim), dtype=jnp.float32)
    params = init_mlp2_params(k_p, input_dim, hidden_dim, output_dim, num_layers)

    prepared = prepare_params(params)             # one-time prep (hoisted)

    # 1) Fused path, no sigmoid: exact f32 math, strict tolerance.
    out = jax.block_until_ready(mlp2_forward(x, prepared))
    ref = mlp2_reference(x, params)
    assert out.shape == (2, 100, output_dim), out.shape
    assert jnp.allclose(out, ref, atol=1e-5, rtol=1e-5), "fused f32 mismatch"

    # 2) Fused path with sigmoid (approx-reciprocal EUP epilogue -> looser tol).
    out_s = jax.block_until_ready(mlp2_forward(x, prepared, sigmoid_output=True))
    ref_s = mlp2_reference(x, params, sigmoid_output=True)
    assert jnp.allclose(out_s, ref_s, atol=5e-3, rtol=5e-3), "fused sigmoid mismatch"

    # 3) Tiled-K/N fallback (the v7x large-weight path), forced for coverage.
    out_t = jax.block_until_ready(
        mlp2_forward(x, prepared, sigmoid_output=True, force_tiled=True))
    assert jnp.allclose(out_t, ref_s, atol=5e-3, rtol=5e-3), "tiled path mismatch"

    # 4) bf16 weights (v6e/v7x fast-MXU / half-resident-VMEM path), f32 accum.
    prepared_bf16 = prepare_params(params, param_dtype=jnp.bfloat16)
    out_b = jax.block_until_ready(mlp2_forward(x, prepared_bf16))
    assert jnp.allclose(out_b, ref, atol=5e-2, rtol=5e-2), "bf16 path mismatch"

    print("KERNEL_OK")
</pallas_src>

<mosaic_0001>
module attributes {stable_mosaic.version = 11 : i64} {
  func.func @_mlp_fused_kernel(%arg0: i32, %arg1: memref<56x32xf32, #tpu.memory_space<vmem>>, %arg2: memref<32x32xf32, #tpu.memory_space<vmem>>, %arg3: memref<1x32xf32, #tpu.memory_space<vmem>>, %arg4: memref<32x32xf32, #tpu.memory_space<vmem>>, %arg5: memref<1x32xf32, #tpu.memory_space<vmem>>, %arg6: memref<32x16xf32, #tpu.memory_space<vmem>>, %arg7: memref<1x16xf32, #tpu.memory_space<vmem>>, %arg8: memref<56x16xf32, #tpu.memory_space<vmem>>) attributes {dimension_semantics = [#tpu.dimension_semantics<parallel>], iteration_bounds = array<i64: 4>, scalar_prefetch = 0 : i64, scratch_operands = 0 : i64, tpu.core_type = #tpu.core_type<tc>, window_params = [{transform_indices = @transform_0, window_bounds = array<i64: 56, 32>}, {pipeline_mode = #tpu.pipeline_mode<synchronous>, transform_indices = @transform_1, window_bounds = array<i64: 32, 32>}, {pipeline_mode = #tpu.pipeline_mode<synchronous>, transform_indices = @transform_2, window_bounds = array<i64: 1, 32>}, {pipeline_mode = #tpu.pipeline_mode<synchronous>, transform_indices = @transform_3, window_bounds = array<i64: 32, 32>}, {pipeline_mode = #tpu.pipeline_mode<synchronous>, transform_indices = @transform_4, window_bounds = array<i64: 1, 32>}, {pipeline_mode = #tpu.pipeline_mode<synchronous>, transform_indices = @transform_5, window_bounds = array<i64: 32, 16>}, {pipeline_mode = #tpu.pipeline_mode<synchronous>, transform_indices = @transform_6, window_bounds = array<i64: 1, 16>}, {transform_indices = @transform_7, window_bounds = array<i64: 56, 16>}]} {
    %c0 = arith.constant 0 : index
    %c0_0 = arith.constant 0 : index
    %0 = vector.load %arg1[%c0, %c0_0] : memref<56x32xf32, #tpu.memory_space<vmem>>, vector<56x32xf32>
    %c0_1 = arith.constant 0 : index
    %c0_2 = arith.constant 0 : index
    %1 = vector.load %arg2[%c0_1, %c0_2] : memref<32x32xf32, #tpu.memory_space<vmem>>, vector<32x32xf32>
    %c0_3 = arith.constant 0 : index
    %c0_4 = arith.constant 0 : index
    %2 = vector.load %arg3[%c0_3, %c0_4] : memref<1x32xf32, #tpu.memory_space<vmem>>, vector<1x32xf32>
    %cst = arith.constant dense<0.000000e+00> : vector<56x32xf32>
    %3 = tpu.matmul %0, %1, %cst {dimension_numbers = #tpu.dot_dimension_numbers<[1], [0], [0], [1], [0, 0, 1, 1], [], []>} : vector<56x32xf32>, vector<32x32xf32>, vector<56x32xf32> -> vector<56x32xf32>
    %4 = vector.broadcast %2 : vector<1x32xf32> to vector<56x32xf32>
    %5 = arith.addf %3, %4 : vector<56x32xf32>
    %cst_5 = arith.constant 0.000000e+00 : f32
    %6 = vector.broadcast %cst_5 : f32 to vector<56x32xf32>
    %7 = arith.maximumf %5, %6 : vector<56x32xf32>
    %c0_6 = arith.constant 0 : index
    %c0_7 = arith.constant 0 : index
    %8 = vector.load %arg4[%c0_6, %c0_7] : memref<32x32xf32, #tpu.memory_space<vmem>>, vector<32x32xf32>
    %c0_8 = arith.constant 0 : index
    %c0_9 = arith.constant 0 : index
    %9 = vector.load %arg5[%c0_8, %c0_9] : memref<1x32xf32, #tpu.memory_space<vmem>>, vector<1x32xf32>
    %cst_10 = arith.constant dense<0.000000e+00> : vector<56x32xf32>
    %10 = tpu.matmul %7, %8, %cst_10 {dimension_numbers = #tpu.dot_dimension_numbers<[1], [0], [0], [1], [0, 0, 1, 1], [], []>} : vector<56x32xf32>, vector<32x32xf32>, vector<56x32xf32> -> vector<56x32xf32>
    %11 = vector.broadcast %9 : vector<1x32xf32> to vector<56x32xf32>
    %12 = arith.addf %10, %11 : vector<56x32xf32>
    %cst_11 = arith.constant 0.000000e+00 : f32
    %13 = vector.broadcast %cst_11 : f32 to vector<56x32xf32>
    %14 = arith.maximumf %12, %13 : vector<56x32xf32>
    %c0_12 = arith.constant 0 : index
    %c0_13 = arith.constant 0 : index
    %15 = vector.load %arg6[%c0_12, %c0_13] : memref<32x16xf32, #tpu.memory_space<vmem>>, vector<32x16xf32>
    %c0_14 = arith.constant 0 : index
    %c0_15 = arith.constant 0 : index
    %16 = vector.load %arg7[%c0_14, %c0_15] : memref<1x16xf32, #tpu.memory_space<vmem>>, vector<1x16xf32>
    %cst_16 = arith.constant dense<0.000000e+00> : vector<56x16xf32>
    %17 = tpu.matmul %14, %15, %cst_16 {dimension_numbers = #tpu.dot_dimension_numbers<[1], [0], [0], [1], [0, 0, 1, 1], [], []>} : vector<56x32xf32>, vector<32x16xf32>, vector<56x16xf32> -> vector<56x16xf32>
    %18 = vector.broadcast %16 : vector<1x16xf32> to vector<56x16xf32>
    %19 = arith.addf %17, %18 : vector<56x16xf32>
    %c0_17 = arith.constant 0 : index
    %c0_18 = arith.constant 0 : index
    %20 = vector.load %arg8[%c0_17, %c0_18] : memref<56x16xf32, #tpu.memory_space<vmem>>, vector<56x16xf32>
    tpu.vector_store %arg8[%c0_17, %c0_18], %19 {strides = array<i32>} : memref<56x16xf32, #tpu.memory_space<vmem>>, vector<56x16xf32>,
    return
  }
  func.func @transform_0(%arg0: i32) -> (i32, i32) {
    %c0_i32 = arith.constant 0 : i32
    %c0_i32_0 = arith.constant 0 : i32
    return %arg0, %c0_i32 : i32, i32
  }
  func.func @transform_1(%arg0: i32) -> (i32, i32) {
    %c0_i32 = arith.constant 0 : i32
    %c0_i32_0 = arith.constant 0 : i32
    %c0_i32_1 = arith.constant 0 : i32
    return %c0_i32, %c0_i32_0 : i32, i32
  }
  func.func @transform_2(%arg0: i32) -> (i32, i32) {
    %c0_i32 = arith.constant 0 : i32
    %c0_i32_0 = arith.constant 0 : i32
    %c0_i32_1 = arith.constant 0 : i32
    return %c0_i32, %c0_i32_0 : i32, i32
  }
  func.func @transform_3(%arg0: i32) -> (i32, i32) {
    %c0_i32 = arith.constant 0 : i32
    %c0_i32_0 = arith.constant 0 : i32
    %c0_i32_1 = arith.constant 0 : i32
    return %c0_i32, %c0_i32_0 : i32, i32
  }
  func.func @transform_4(%arg0: i32) -> (i32, i32) {
    %c0_i32 = arith.constant 0 : i32
    %c0_i32_0 = arith.constant 0 : i32
    %c0_i32_1 = arith.constant 0 : i32
    return %c0_i32, %c0_i32_0 : i32, i32
  }
  func.func @transform_5(%arg0: i32) -> (i32, i32) {
    %c0_i32 = arith.constant 0 : i32
    %c0_i32_0 = arith.constant 0 : i32
    %c0_i32_1 = arith.constant 0 : i32
    return %c0_i32, %c0_i32_0 : i32, i32
  }
  func.func @transform_6(%arg0: i32) -> (i32, i32) {
    %c0_i32 = arith.constant 0 : i32
    %c0_i32_0 = arith.constant 0 : i32
    %c0_i32_1 = arith.constant 0 : i32
    return %c0_i32, %c0_i32_0 : i32, i32
  }
  func.func @transform_7(%arg0: i32) -> (i32, i32) {
    %c0_i32 = arith.constant 0 : i32
    %c0_i32_0 = arith.constant 0 : i32
    return %arg0, %c0_i32 : i32, i32
  }
}

module attributes {stable_mosaic.version = 11 : i64} {
  func.func @_mlp_fused_kernel(%arg0: i32, %arg1: memref<56x32xf32, #tpu.memory_space<vmem>>, %arg2: memref<32x32xf32, #tpu.memory_space<vmem>>, %arg3: memref<1x32xf32, #tpu.memory_space<vmem>>, %arg4: memref<32x32xf32, #tpu.memory_space<vmem>>, %arg5: memref<1x32xf32, #tpu.memory_space<vmem>>, %arg6: memref<32x16xf32, #tpu.memory_space<vmem>>, %arg7: memref<1x16xf32, #tpu.memory_space<vmem>>, %arg8: memref<56x16xf32, #tpu.memory_space<vmem>>) attributes {dimension_semantics = [#tpu.dimension_semantics<parallel>], iteration_bounds = array<i64: 4>, scalar_prefetch = 0 : i64, scratch_operands = 0 : i64, tpu.core_type = #tpu.core_type<tc>, window_params = [{transform_indices = @transform_0, window_bounds = array<i64: 56, 32>}, {pipeline_mode = #tpu.pipeline_mode<synchronous>, transform_indices = @transform_1, window_bounds = array<i64: 32, 32>}, {pipeline_mode = #tpu.pipeline_mode<synchronous>, transform_indices = @transform_2, window_bounds = array<i64: 1, 32>}, {pipeline_mode = #tpu.pipeline_mode<synchronous>, transform_indices = @transform_3, window_bounds = array<i64: 32, 32>}, {pipeline_mode = #tpu.pipeline_mode<synchronous>, transform_indices = @transform_4, window_bounds = array<i64: 1, 32>}, {pipeline_mode = #tpu.pipeline_mode<synchronous>, transform_indices = @transform_5, window_bounds = array<i64: 32, 16>}, {pipeline_mode = #tpu.pipeline_mode<synchronous>, transform_indices = @transform_6, window_bounds = array<i64: 1, 16>}, {transform_indices = @transform_7, window_bounds = array<i64: 56, 16>}]} {
    %c0 = arith.constant 0 : index
    %c0_0 = arith.constant 0 : index
    %0 = vector.load %arg1[%c0, %c0_0] : memref<56x32xf32, #tpu.memory_space<vmem>>, vector<56x32xf32>
    %c0_1 = arith.constant 0 : index
    %c0_2 = arith.constant 0 : index
    %1 = vector.load %arg2[%c0_1, %c0_2] : memref<32x32xf32, #tpu.memory_space<vmem>>, vector<32x32xf32>
    %c0_3 = arith.constant 0 : index
    %c0_4 = arith.constant 0 : index
    %2 = vector.load %arg3[%c0_3, %c0_4] : memref<1x32xf32, #tpu.memory_space<vmem>>, vector<1x32xf32>
    %cst = arith.constant dense<0.000000e+00> : vector<56x32xf32>
    %3 = tpu.matmul %0, %1, %cst {dimension_numbers = #tpu.dot_dimension_numbers<[1], [0], [0], [1], [0, 0, 1, 1], [], []>} : vector<56x32xf32>, vector<32x32xf32>, vector<56x32xf32> -> vector<56x32xf32>
    %4 = vector.broadcast %2 : vector<1x32xf32> to vector<56x32xf32>
    %5 = arith.addf %3, %4 : vector<56x32xf32>
    %cst_5 = arith.constant 0.000000e+00 : f32
    %6 = vector.broadcast %cst_5 : f32 to vector<56x32xf32>
    %7 = arith.maximumf %5, %6 : vector<56x32xf32>
    %c0_6 = arith.constant 0 : index
    %c0_7 = arith.constant 0 : index
    %8 = vector.load %arg4[%c0_6, %c0_7] : memref<32x32xf32, #tpu.memory_space<vmem>>, vector<32x32xf32>
    %c0_8 = arith.constant 0 : index
    %c0_9 = arith.constant 0 : index
    %9 = vector.load %arg5[%c0_8, %c0_9] : memref<1x32xf32, #tpu.memory_space<vmem>>, vector<1x32xf32>
    %cst_10 = arith.constant dense<0.000000e+00> : vector<56x32xf32>
    %10 = tpu.matmul %7, %8, %cst_10 {dimension_numbers = #tpu.dot_dimension_numbers<[1], [0], [0], [1], [0, 0, 1, 1], [], []>} : vector<56x32xf32>, vector<32x32xf32>, vector<56x32xf32> -> vector<56x32xf32>
    %11 = vector.broadcast %9 : vector<1x32xf32> to vector<56x32xf32>
    %12 = arith.addf %10, %11 : vector<56x32xf32>
    %cst_11 = arith.constant 0.000000e+00 : f32
    %13 = vector.broadcast %cst_11 : f32 to vector<56x32xf32>
    %14 = arith.maximumf %12, %13 : vector<56x32xf32>
    %c0_12 = arith.constant 0 : index
    %c0_13 = arith.constant 0 : index
    %15 = vector.load %arg6[%c0_12, %c0_13] : memref<32x16xf32, #tpu.memory_space<vmem>>, vector<32x16xf32>
    %c0_14 = arith.constant 0 : index
    %c0_15 = arith.constant 0 : index
    %16 = vector.load %arg7[%c0_14, %c0_15] : memref<1x16xf32, #tpu.memory_space<vmem>>, vector<1x16xf32>
    %cst_16 = arith.constant dense<0.000000e+00> : vector<56x16xf32>
    %17 = tpu.matmul %14, %15, %cst_16 {dimension_numbers = #tpu.dot_dimension_numbers<[1], [0], [0], [1], [0, 0, 1, 1], [], []>} : vector<56x32xf32>, vector<32x16xf32>, vector<56x16xf32> -> vector<56x16xf32>
    %18 = vector.broadcast %16 : vector<1x16xf32> to vector<56x16xf32>
    %19 = arith.addf %17, %18 : vector<56x16xf32>
    %c0_17 = arith.constant 0 : index
    %c0_18 = arith.constant 0 : index
    %20 = vector.load %arg8[%c0_17, %c0_18] : memref<56x16xf32, #tpu.memory_space<vmem>>, vector<56x16xf32>
    tpu.vector_store %arg8[%c0_17, %c0_18], %19 {strides = array<i32>} : memref<56x16xf32, #tpu.memory_space<vmem>>, vector<56x16xf32>,
    return
  }
  func.func @transform_0(%arg0: i32) -> (i32, i32) {
    %c0_i32 = arith.constant 0 : i32
    %c0_i32_0 = arith.constant 0 : i32
    return %arg0, %c0_i32 : i32, i32
  }
  func.func @transform_1(%arg0: i32) -> (i32, i32) {
    %c0_i32 = arith.constant 0 : i32
    %c0_i32_0 = arith.constant 0 : i32
    %c0_i32_1 = arith.constant 0 : i32
    return %c0_i32, %c0_i32_0 : i32, i32
  }
  func.func @transform_2(%arg0: i32) -> (i32, i32) {
    %c0_i32 = arith.constant 0 : i32
    %c0_i32_0 = arith.constant 0 : i32
    %c0_i32_1 = arith.constant 0 : i32
    return %c0_i32, %c0_i32_0 : i32, i32
  }
  func.func @transform_3(%arg0: i32) -> (i32, i32) {
    %c0_i32 = arith.constant 0 : i32
    %c0_i32_0 = arith.constant 0 : i32
    %c0_i32_1 = arith.constant 0 : i32
    return %c0_i32, %c0_i32_0 : i32, i32
  }
  func.func @transform_4(%arg0: i32) -> (i32, i32) {
    %c0_i32 = arith.constant 0 : i32
    %c0_i32_0 = arith.constant 0 : i32
    %c0_i32_1 = arith.constant 0 : i32
    return %c0_i32, %c0_i32_0 : i32, i32
  }
  func.func @transform_5(%arg0: i32) -> (i32, i32) {
    %c0_i32 = arith.constant 0 : i32
    %c0_i32_0 = arith.constant 0 : i32
    %c0_i32_1 = arith.constant 0 : i32
    return %c0_i32, %c0_i32_0 : i32, i32
  }
  func.func @transform_6(%arg0: i32) -> (i32, i32) {
    %c0_i32 = arith.constant 0 : i32
    %c0_i32_0 = arith.constant 0 : i32
    %c0_i32_1 = arith.constant 0 : i32
    return %c0_i32, %c0_i32_0 : i32, i32
  }
  func.func @transform_7(%arg0: i32) -> (i32, i32) {
    %c0_i32 = arith.constant 0 : i32
    %c0_i32_0 = arith.constant 0 : i32
    return %arg0, %c0_i32 : i32, i32
  }
}

</mosaic_0001>

<bundles_post_ra>
// kernel: tpu_custom_call.1
= control target key start
LH: loop header
LB: loop body
LE: loop exit
PB: predicated region body
PF: predicated region fallthrough
CT: control target
= control target key end

     0   :  { %s985_s24 = smov 0   ;;  %s1149_s0 = inlined_call_operand.vmem [shape: f32[224,32], index: 0, kind: input, shape index: {}]   ;;  %s1150_s1 = inlined_call_operand.vmem [shape: f32[32,32], index: 1, kind: input, shape index: {}]   ;;  %s1151_s2 = inlined_call_operand.vmem [shape: f32[1,32], index: 2, kind: input, shape index: {}]   ;;  %s1152_s3 = inlined_call_operand.vmem [shape: f32[32,32], index: 3, kind: input, shape index: {}]   ;;  %s1153_s4 = inlined_call_operand.vmem [shape: f32[1,32], index: 4, kind: input, shape index: {}]   ;;  %s1154_s5 = inlined_call_operand.vmem [shape: f32[32,16], index: 5, kind: input, shape index: {}]   ;;  %s1155_s6 = inlined_call_operand.vmem [shape: f32[1,16], index: 6, kind: input, shape index: {}]   ;;  %s1156_s7 = inlined_call_operand.vmem [shape: f32[224,16], index: 7, kind: output, shape index: {}]  }
   0x1 LB: > { %s764_s25 = sadd.s32 4294967295, %s941_s24   ;;  %p768_p0 = scmp.ge.s32.totalorder %s941_s24, 1  ;;  %s941_s24 = sphi %s985_s24, %s17_s24  }
   0x2   : > { %p238_p1 = scmp.lt.s32.totalorder %s941_s24, 5 }
   0x4   : > { %p239_p2 = pnand %p768_p0, %p238_p1 }
   0x5   : > { %s270_s28 = smul.u32 (!%p239_p2), 7, %s764_s25 }
   0x6   : > { %242 = sbr.rel (%p239_p2) target bundleno = 634 (0x27a), region = 48 }
   0x7   : > { %p271_p3 = scmp.lt.s32.totalorder (!%p239_p2), %s270_s28, 27 }
   0xb   : > { %v292_v0 = vld [vmem:[%s1150_s1 + $0x18] sm:$0xff]  ;;  %v943_v1 = vmov 0.0   ;;  %v291_v2 = vld [vmem:[%s1150_s1 + $0x10] sm:$0xff]  ;;  %vm944_vm0 = vmmov 0   ;;  %v290_v3 = vld [vmem:[%s1150_s1 + $0x8] sm:$0xff]  ;;  %s1158_s28 = smov (!%p271_p3, %s270_s28), 27 }
   0xc   : > { %830 = vmatprep.subr.mxu0 %v943_v1  ;;  %838 = vmatprep.mubr.msk.f32.mxu0 %vm944_vm0, %v943_v1  ;;  %v289_v4 = vld [vmem:[%s1150_s1] sm:$0xff]  ;;  %s769_s12 = sshll.u32 %s1158_s28, 3  ;;  %vm300_vm1 = vcmask 261120   ;;  %v432_v7 = vld [vmem:[%s1152_s3 + $0x18] sm:$0xff]  ;;  %v431_v9 = vld [vmem:[%s1152_s3 + $0x10] sm:$0xff]  ;;  %vm700_vm2 = vcmask 130048  }
   0xd   : > { %831 = vmatpush3.msra.mxu0 %v292_v0  ;;  %917 = vmatprep.subr.mxu1 %v943_v1  ;;  %s1022_s15 = scalar_lea.vmem %s1149_s0, %s769_s12  ;;  %v430_v11 = vld [vmem:[%s1152_s3 + $0x8] sm:$0xff]  ;;  %v429_v15 = vld [vmem:[%s1152_s3] sm:$0xff]  ;;  %v571_v16 = vld [vmem:[%s1154_s5 + $0x18] sm:$0xff]  ;;  %s280_s20 = scalar_lea.vmem %s1156_s7, %s769_s12 }
   0xe   : > { %832 = vmatprep.subr.mxu0 %v943_v1  ;;  %921 = vmatpush3.msra.mxu1 %v292_v0  ;;  %v282_v5 = vld [vmem:[%s1022_s15] sm:$0xff]  ;;  %v283_v8 = vld [vmem:[%s1022_s15 + $0x8] sm:$0xff]  ;;  %v284_v12 = vld [vmem:[%s1022_s15 + $0x10] sm:$0xff] }
   0xf   : > { %833 = vmatpush3.msra.mxu0 %v291_v2  ;;  %918 = vmatprep.subr.mxu1 %v943_v1  ;;  %v286_v6 = vld [vmem:[%s1022_s15 + $0x20] sm:$0xff]  ;;  %v287_v10 = vld [vmem:[%s1022_s15 + $0x28] sm:$0xff]  ;;  %v288_v13 = vld [vmem:[%s1022_s15 + $0x30] sm:$0xff] }
  0x10   : > { %834 = vmatprep.subr.mxu0 %v943_v1  ;;  %922 = vmatpush3.msra.mxu1 %v291_v2  ;;  %v285_v14 = vld [vmem:[%s1022_s15 + $0x18] sm:$0xff]  ;;  %v570_v17 = vld [vmem:[%s1154_s5 + $0x10] sm:$0xff]  ;;  %v569_v18 = vld [vmem:[%s1154_s5 + $0x8] sm:$0xff] }
  0x11   : > { %835 = vmatpush3.msra.mxu0 %v290_v3  ;;  %919 = vmatprep.subr.mxu1 %v943_v1  ;;  %v771_v19 = vld [vmem:[%s1151_s2] ss:$0 sm:$0xff] }
  0x12   : > { %836 = vmatprep.subr.mxu0 %v943_v1  ;;  %923 = vmatpush3.msra.mxu1 %v290_v3  ;;  %v568_v48 = vld [vmem:[%s1154_s5] sm:$0xff] }
  0x13   : > { %837 = vmatpush3.msra.mxu0 %v289_v4  ;;  %920 = vmatprep.subr.mxu1 %v943_v1  ;;  %v779_v49 = vld [vmem:[%s1153_s4] ss:$0 sm:$0xff] }
  0x14   : > { %839 = vmatmul.mubr.msk.f32.vlgmr.msra.gmra.mxu0 %vm300_vm1, %v282_v5  ;;  %924 = vmatpush3.msra.mxu1 %v289_v4 }
  0x15   : > { %841 = vmatprep.mubr.msk.f32.mxu0 %vm944_vm0, %v943_v1  ;;  %850 = vmatprep.mubr.msk.f32.mxu1 %vm944_vm0, %v943_v1 }
  0x16   : > { %851 = vmatmul.mubr.msk.f32.vlgmr.msra.gmra.mxu1 %vm300_vm1, %v286_v6  ;;  %859 = vmatprep.subr.mxu1 %v943_v1 }
  0x17   : > { %853 = vmatprep.mubr.msk.f32.mxu1 %vm944_vm0, %v943_v1  ;;  %860 = vmatpush3.msra.mxu1 %v432_v7 }
  0x18   : > { %842 = vmatmul.mubr.msk.f32.gmra.mxu0 %vm300_vm1, %v283_v8  ;;  %861 = vmatprep.subr.mxu1 %v943_v1 }
  0x19   : > { %844 = vmatprep.mubr.msk.f32.mxu0 %vm944_vm0, %v943_v1  ;;  %862 = vmatpush3.msra.mxu1 %v431_v9 }
  0x1a   : > { %854 = vmatmul.mubr.msk.f32.gmra.mxu1 %vm300_vm1, %v287_v10  ;;  %863 = vmatprep.subr.mxu1 %v943_v1 }
  0x1b   : > { %856 = vmatprep.mubr.msk.f32.mxu1 %vm944_vm0, %v943_v1  ;;  %864 = vmatpush3.msra.mxu1 %v430_v11 }
  0x1c   : > { %845 = vmatmul.mubr.msk.f32.gmra.mxu0 %vm300_vm1, %v284_v12  ;;  %865 = vmatprep.subr.mxu1 %v943_v1 }
  0x1d   : > { %847 = vmatprep.mubr.msk.f32.mxu0 %vm944_vm0, %v943_v1  ;;  %888 = vmatprep.subr.mxu0 %v943_v1 }
  0x1e   : > { %857 = vmatmul.mubr.msk.f32.gmra.mxu1 %vm300_vm1, %v288_v13  ;;  %889 = vmatpush3.msra.mxu0 %v571_v16 }
  0x1f   : > { %867 = vmatprep.mubr.msk.f32.mxu1 %vm944_vm0, %v943_v1  ;;  %866 = vmatpush3.msra.mxu1 %v429_v15  ;;  %v787_v15 = vld [vmem:[%s1155_s6] ss:$0 sm:$0xff] }
  0x20   : > { %848 = vmatmul.mubr.msk.f32.gmra.mxu0 %vm300_vm1, %v285_v14  ;;  %890 = vmatprep.subr.mxu0 %v943_v1 }
  0x21   : > { %896 = vmatprep.mubr.msk.f32.mxu0 %vm944_vm0, %v943_v1  ;;  %891 = vmatpush3.msra.mxu0 %v570_v17 }
  0x22   : > { %892 = vmatprep.subr.mxu0 %v943_v1 }
  0x23   : > { %893 = vmatpush3.msra.mxu0 %v569_v18 }
  0x24   : > { %894 = vmatprep.subr.mxu0 %v943_v1 }
  0x25   : > { %895 = vmatpush3.msra.mxu0 %v568_v48 }
  0xd4   : > { %v388_v20 = vpop.f32.mrf.mxu0 }
  0xd5   : > { %v389_v21 = vadd.f32 %v771_v19, %v388_v20 }
  0xd6   : > { %v840_v22 = vpop.f32.mrf.mxu0  ;;  %v408_v23 = vpop.f32.mrf.mxu1 }
  0xd7   : > { %v422_v24 = vmax.f32 %v389_v21, 0.0  ;;  %v409_v40 = vadd.f32 %v771_v19, %v408_v23 }
  0xd8   : > { %v393_v25 = vpop.f32.mrf.mxu0  ;;  %v852_v26 = vpop.f32.mrf.mxu1 }
  0xd9   : > { %v394_v27 = vadd.f32 %v771_v19, %v393_v25  ;;  %868 = vmatmul.mubr.msk.f32.vlgmr.msra.gmra.mxu1 %vm300_vm1, %v422_v24  ;;  %v426_v43 = vmax.f32 %v409_v40, 0.0 }
  0xda   : > { %v843_v28 = vpop.f32.mrf.mxu0  ;;  %870 = vmatprep.mubr.msk.f32.mxu1 %vm944_vm0, %v943_v1  ;;  %v413_v29 = vpop.f32.mrf.mxu1 }
  0xdb   : > { %v423_v30 = vmax.f32 %v394_v27, 0.0  ;;  %v414_v44 = vadd.f32 %v771_v19, %v413_v29 }
  0xdc   : > { %v398_v31 = vpop.f32.mrf.mxu0  ;;  %v855_v32 = vpop.f32.mrf.mxu1 }
  0xdd   : > { %v399_v33 = vadd.f32 %v771_v19, %v398_v31  ;;  %871 = vmatmul.mubr.msk.f32.gmra.mxu1 %vm300_vm1, %v423_v30  ;;  %v427_v45 = vmax.f32 %v414_v44, 0.0 }
  0xde   : > { %v846_v34 = vpop.f32.mrf.mxu0  ;;  %873 = vmatprep.mubr.msk.f32.mxu1 %vm944_vm0, %v943_v1  ;;  %v418_v35 = vpop.f32.mrf.mxu1 }
  0xdf   : > { %v424_v36 = vmax.f32 %v399_v33, 0.0  ;;  %v419_v46 = vadd.f32 %v771_v19, %v418_v35 }
  0xe0   : > { %v403_v37 = vpop.f32.mrf.mxu0  ;;  %v858_v38 = vpop.f32.mrf.mxu1 }
  0xe1   : > { %v404_v39 = vadd.f32 %v771_v19, %v403_v37  ;;  %874 = vmatmul.mubr.msk.f32.gmra.mxu1 %vm300_vm1, %v424_v36  ;;  %v428_v47 = vmax.f32 %v419_v46, 0.0 }
  0xe2   : > { %v849_v41 = vpop.f32.mrf.mxu0  ;;  %876 = vmatprep.mubr.msk.f32.mxu1 %vm944_vm0, %v943_v1 }
  0xe3   : > { %v425_v42 = vmax.f32 %v404_v39, 0.0 }
  0xe5   : > { %877 = vmatmul.mubr.msk.f32.gmra.mxu1 %vm300_vm1, %v425_v42 }
  0xe6   : > { %879 = vmatprep.mubr.msk.f32.mxu1 %vm944_vm0, %v943_v1 }
  0xe9   : > { %880 = vmatmul.mubr.msk.f32.gmra.mxu1 %vm300_vm1, %v426_v43 }
  0xea   : > { %882 = vmatprep.mubr.msk.f32.mxu1 %vm944_vm0, %v943_v1 }
  0xed   : > { %883 = vmatmul.mubr.msk.f32.gmra.mxu1 %vm300_vm1, %v427_v45 }
  0xee   : > { %885 = vmatprep.mubr.msk.f32.mxu1 %vm944_vm0, %v943_v1 }
  0xf1   : > { %886 = vmatmul.mubr.msk.f32.gmra.mxu1 %vm300_vm1, %v428_v47 }
 0x199   : > { %v527_v50 = vpop.f32.mrf.mxu1 }
 0x19a   : > { %v528_v51 = vadd.f32 %v779_v49, %v527_v50 }
 0x19b   : > { %v869_v52 = vpop.f32.mrf.mxu1 }
 0x19c   : > { %v561_v53 = vmax.f32 %v528_v51, 0.0 }
 0x19d   : > { %v532_v54 = vpop.f32.mrf.mxu1 }
 0x19e   : > { %v533_v55 = vadd.f32 %v779_v49, %v532_v54  ;;  %897 = vmatmul.mubr.msk.f32.vlgmr.msra.gmra.mxu0 %vm300_vm1, %v561_v53 }
 0x19f   : > { %v872_v56 = vpop.f32.mrf.mxu1  ;;  %899 = vmatprep.mubr.msk.f32.mxu0 %vm944_vm0, %v943_v1 }
 0x1a0   : > { %v562_v57 = vmax.f32 %v533_v55, 0.0 }
 0x1a1   : > { %v537_v58 = vpop.f32.mrf.mxu1 }
 0x1a2   : > { %v538_v59 = vadd.f32 %v779_v49, %v537_v58  ;;  %900 = vmatmul.mubr.msk.f32.gmra.mxu0 %vm300_vm1, %v562_v57 }
 0x1a3   : > { %v875_v60 = vpop.f32.mrf.mxu1  ;;  %902 = vmatprep.mubr.msk.f32.mxu0 %vm944_vm0, %v943_v1 }
 0x1a4   : > { %v563_v61 = vmax.f32 %v538_v59, 0.0 }
 0x1a5   : > { %v542_v62 = vpop.f32.mrf.mxu1 }
 0x1a6   : > { %v543_v63 = vadd.f32 %v779_v49, %v542_v62  ;;  %903 = vmatmul.mubr.msk.f32.gmra.mxu0 %vm300_vm1, %v563_v61 }
 0x1a7   : > { %v878_v0 = vpop.f32.mrf.mxu1  ;;  %905 = vmatprep.mubr.msk.f32.mxu0 %vm944_vm0, %v943_v1 }
 0x1a8   : > { %v564_v2 = vmax.f32 %v543_v63, 0.0 }
 0x1a9   : > { %v547_v3 = vpop.f32.mrf.mxu1 }
 0x1aa   : > { %v548_v4 = vadd.f32 %v779_v49, %v547_v3  ;;  %906 = vmatmul.mubr.msk.f32.gmra.mxu0 %vm300_vm1, %v564_v2 }
 0x1ab   : > { %v881_v5 = vpop.f32.mrf.mxu1  ;;  %908 = vmatprep.mubr.msk.f32.mxu0 %vm944_vm0, %v943_v1 }
 0x1ac   : > { %v565_v6 = vmax.f32 %v548_v4, 0.0 }
 0x1ad   : > { %v552_v7 = vpop.f32.mrf.mxu1 }
 0x1ae   : > { %v553_v8 = vadd.f32 %v779_v49, %v552_v7  ;;  %909 = vmatmul.mubr.msk.f32.gmra.mxu0 %vm300_vm1, %v565_v6 }
 0x1af   : > { %v884_v9 = vpop.f32.mrf.mxu1  ;;  %911 = vmatprep.mubr.msk.f32.mxu0 %vm944_vm0, %v943_v1 }
 0x1b0   : > { %v566_v10 = vmax.f32 %v553_v8, 0.0 }
 0x1b1   : > { %v557_v11 = vpop.f32.mrf.mxu1 }
 0x1b2   : > { %v558_v12 = vadd.f32 %v779_v49, %v557_v11  ;;  %912 = vmatmul.mubr.msk.f32.gmra.mxu0 %vm300_vm1, %v566_v10 }
 0x1b3   : > { %v887_v13 = vpop.f32.mrf.mxu1  ;;  %914 = vmatprep.mubr.msk.f32.mxu0 %vm944_vm0, %v943_v1 }
 0x1b4   : > { %v567_v14 = vmax.f32 %v558_v12, 0.0 }
 0x1b6   : > { %915 = vmatmul.mubr.msk.f32.gmra.mxu0 %vm300_vm1, %v567_v14 }
 0x25e   : > { %v666_v16 = vpop.f32.mrf.mxu0 }
 0x25f   : > { %v667_v17 = vadd.f32 %v787_v15, %v666_v16 }
 0x260   : > { %v898_v18 = vpop.f32.mrf.mxu0 }
 0x261   : > { %701 = vst.msk [vmem:[%s280_s20] sm:$0xff] %vm700_vm2, %v667_v17 }
 0x262   : > { %v671_v19 = vpop.f32.mrf.mxu0 }
 0x263   : > { %v672_v1 = vadd.f32 %v787_v15, %v671_v19 }
 0x264   : > { %v901_v20 = vpop.f32.mrf.mxu0 }
 0x265   : > { %702 = vst.msk [vmem:[%s280_s20 + $0x8] sm:$0xff] %vm700_vm2, %v672_v1 }
 0x266   : > { %v676_v21 = vpop.f32.mrf.mxu0 }
 0x267   : > { %v677_v22 = vadd.f32 %v787_v15, %v676_v21 }
 0x268   : > { %v904_v23 = vpop.f32.mrf.mxu0 }
 0x269   : > { %703 = vst.msk [vmem:[%s280_s20 + $0x10] sm:$0xff] %vm700_vm2, %v677_v22 }
 0x26a   : > { %v681_v24 = vpop.f32.mrf.mxu0 }
 0x26b   : > { %v682_v25 = vadd.f32 %v787_v15, %v681_v24 }
 0x26c   : > { %v907_v26 = vpop.f32.mrf.mxu0 }
 0x26d   : > { %704 = vst.msk [vmem:[%s280_s20 + $0x18] sm:$0xff] %vm700_vm2, %v682_v25 }
 0x26e   : > { %v686_v27 = vpop.f32.mrf.mxu0 }
 0x26f   : > { %v687_v28 = vadd.f32 %v787_v15, %v686_v27 }
 0x270   : > { %v910_v29 = vpop.f32.mrf.mxu0 }
 0x271   : > { %705 = vst.msk [vmem:[%s280_s20 + $0x20] sm:$0xff] %vm700_vm2, %v687_v28 }
 0x272   : > { %v691_v30 = vpop.f32.mrf.mxu0 }
 0x273   : > { %v692_v31 = vadd.f32 %v787_v15, %v691_v30 }
 0x274   : > { %v913_v32 = vpop.f32.mrf.mxu0 }
 0x275   : > { %706 = vst.msk [vmem:[%s280_s20 + $0x28] sm:$0xff] %vm700_vm2, %v692_v31 }
 0x276   : > { %v696_v33 = vpop.f32.mrf.mxu0 }
 0x277   : > { %v697_v34 = vadd.f32 %v787_v15, %v696_v33 }
 0x278   : > { %v916_v35 = vpop.f32.mrf.mxu0 }
 0x279   : > { %707 = vst.msk [vmem:[%s280_s20 + $0x30] sm:$0xff] %vm700_vm2, %v697_v34 }
 0x27a PF: > { %s17_s24 = sadd.s32 1, %s941_s24  }
 0x27b   : > { %p14_p4 = scmp.ge.s32.totalorder %s17_s24, 6  }
 0x27d   :  { %16 = sbr.rel (!%p14_p4) target bundleno = 1 (0x1), region = 78 }

// kernel: tpu_custom_call.1
= control target key start
LH: loop header
LB: loop body
LE: loop exit
PB: predicated region body
PF: predicated region fallthrough
CT: control target
= control target key end

     0   :  { %s985_s24 = smov 0   ;;  %s1149_s0 = inlined_call_operand.vmem [shape: f32[224,32], index: 0, kind: input, shape index: {}]   ;;  %s1150_s1 = inlined_call_operand.vmem [shape: f32[32,32], index: 1, kind: input, shape index: {}]   ;;  %s1151_s2 = inlined_call_operand.vmem [shape: f32[1,32], index: 2, kind: input, shape index: {}]   ;;  %s1152_s3 = inlined_call_operand.vmem [shape: f32[32,32], index: 3, kind: input, shape index: {}]   ;;  %s1153_s4 = inlined_call_operand.vmem [shape: f32[1,32], index: 4, kind: input, shape index: {}]   ;;  %s1154_s5 = inlined_call_operand.vmem [shape: f32[32,16], index: 5, kind: input, shape index: {}]   ;;  %s1155_s6 = inlined_call_operand.vmem [shape: f32[1,16], index: 6, kind: input, shape index: {}]   ;;  %s1156_s7 = inlined_call_operand.vmem [shape: f32[224,16], index: 7, kind: output, shape index: {}]  }
   0x1 LB: > { %s764_s25 = sadd.s32 4294967295, %s941_s24   ;;  %p768_p0 = scmp.ge.s32.totalorder %s941_s24, 1  ;;  %s941_s24 = sphi %s985_s24, %s17_s24  }
   0x2   : > { %p238_p1 = scmp.lt.s32.totalorder %s941_s24, 5 }
   0x4   : > { %p239_p2 = pnand %p768_p0, %p238_p1 }
   0x5   : > { %s270_s28 = smul.u32 (!%p239_p2), 7, %s764_s25 }
   0x6   : > { %242 = sbr.rel (%p239_p2) target bundleno = 634 (0x27a), region = 48 }
   0x7   : > { %p271_p3 = scmp.lt.s32.totalorder (!%p239_p2), %s270_s28, 27 }
   0xb   : > { %v292_v0 = vld [vmem:[%s1150_s1 + $0x18] sm:$0xff]  ;;  %v943_v1 = vmov 0.0   ;;  %v291_v2 = vld [vmem:[%s1150_s1 + $0x10] sm:$0xff]  ;;  %vm944_vm0 = vmmov 0   ;;  %v290_v3 = vld [vmem:[%s1150_s1 + $0x8] sm:$0xff]  ;;  %s1158_s28 = smov (!%p271_p3, %s270_s28), 27 }
   0xc   : > { %830 = vmatprep.subr.mxu0 %v943_v1  ;;  %838 = vmatprep.mubr.msk.f32.mxu0 %vm944_vm0, %v943_v1  ;;  %v289_v4 = vld [vmem:[%s1150_s1] sm:$0xff]  ;;  %s769_s12 = sshll.u32 %s1158_s28, 3  ;;  %vm300_vm1 = vcmask 261120   ;;  %v432_v7 = vld [vmem:[%s1152_s3 + $0x18] sm:$0xff]  ;;  %v431_v9 = vld [vmem:[%s1152_s3 + $0x10] sm:$0xff]  ;;  %vm700_vm2 = vcmask 130048  }
   0xd   : > { %831 = vmatpush3.msra.mxu0 %v292_v0  ;;  %917 = vmatprep.subr.mxu1 %v943_v1  ;;  %s1022_s15 = scalar_lea.vmem %s1149_s0, %s769_s12  ;;  %v430_v11 = vld [vmem:[%s1152_s3 + $0x8] sm:$0xff]  ;;  %v429_v15 = vld [vmem:[%s1152_s3] sm:$0xff]  ;;  %v571_v16 = vld [vmem:[%s1154_s5 + $0x18] sm:$0xff]  ;;  %s280_s20 = scalar_lea.vmem %s1156_s7, %s769_s12 }
   0xe   : > { %832 = vmatprep.subr.mxu0 %v943_v1  ;;  %921 = vmatpush3.msra.mxu1 %v292_v0  ;;  %v282_v5 = vld [vmem:[%s1022_s15] sm:$0xff]  ;;  %v283_v8 = vld [vmem:[%s1022_s15 + $0x8] sm:$0xff]  ;;  %v284_v12 = vld [vmem:[%s1022_s15 + $0x10] sm:$0xff] }
   0xf   : > { %833 = vmatpush3.msra.mxu0 %v291_v2  ;;  %918 = vmatprep.subr.mxu1 %v943_v1  ;;  %v286_v6 = vld [vmem:[%s1022_s15 + $0x20] sm:$0xff]  ;;  %v287_v10 = vld [vmem:[%s1022_s15 + $0x28] sm:$0xff]  ;;  %v288_v13 = vld [vmem:[%s1022_s15 + $0x30] sm:$0xff] }
  0x10   : > { %834 = vmatprep.subr.mxu0 %v943_v1  ;;  %922 = vmatpush3.msra.mxu1 %v291_v2  ;;  %v285_v14 = vld [vmem:[%s1022_s15 + $0x18] sm:$0xff]  ;;  %v570_v17 = vld [vmem:[%s1154_s5 + $0x10] sm:$0xff]  ;;  %v569_v18 = vld [vmem:[%s1154_s5 + $0x8] sm:$0xff] }
  0x11   : > { %835 = vmatpush3.msra.mxu0 %v290_v3  ;;  %919 = vmatprep.subr.mxu1 %v943_v1  ;;  %v771_v19 = vld [vmem:[%s1151_s2] ss:$0 sm:$0xff] }
  0x12   : > { %836 = vmatprep.subr.mxu0 %v943_v1  ;;  %923 = vmatpush3.msra.mxu1 %v290_v3  ;;  %v568_v48 = vld [vmem:[%s1154_s5] sm:$0xff] }
  0x13   : > { %837 = vmatpush3.msra.mxu0 %v289_v4  ;;  %920 = vmatprep.subr.mxu1 %v943_v1  ;;  %v779_v49 = vld [vmem:[%s1153_s4] ss:$0 sm:$0xff] }
  0x14   : > { %839 = vmatmul.mubr.msk.f32.vlgmr.msra.gmra.mxu0 %vm300_vm1, %v282_v5  ;;  %924 = vmatpush3.msra.mxu1 %v289_v4 }
  0x15   : > { %841 = vmatprep.mubr.msk.f32.mxu0 %vm944_vm0, %v943_v1  ;;  %850 = vmatprep.mubr.msk.f32.mxu1 %vm944_vm0, %v943_v1 }
  0x16   : > { %851 = vmatmul.mubr.msk.f32.vlgmr.msra.gmra.mxu1 %vm300_vm1, %v286_v6  ;;  %859 = vmatprep.subr.mxu1 %v943_v1 }
  0x17   : > { %853 = vmatprep.mubr.msk.f32.mxu1 %vm944_vm0, %v943_v1  ;;  %860 = vmatpush3.msra.mxu1 %v432_v7 }
  0x18   : > { %842 = vmatmul.mubr.msk.f32.gmra.mxu0 %vm300_vm1, %v283_v8  ;;  %861 = vmatprep.subr.mxu1 %v943_v1 }
  0x19   : > { %844 = vmatprep.mubr.msk.f32.mxu0 %vm944_vm0, %v943_v1  ;;  %862 = vmatpush3.msra.mxu1 %v431_v9 }
  0x1a   : > { %854 = vmatmul.mubr.msk.f32.gmra.mxu1 %vm300_vm1, %v287_v10  ;;  %863 = vmatprep.subr.mxu1 %v943_v1 }
  0x1b   : > { %856 = vmatprep.mubr.msk.f32.mxu1 %vm944_vm0, %v943_v1  ;;  %864 = vmatpush3.msra.mxu1 %v430_v11 }
  0x1c   : > { %845 = vmatmul.mubr.msk.f32.gmra.mxu0 %vm300_vm1, %v284_v12  ;;  %865 = vmatprep.subr.mxu1 %v943_v1 }
  0x1d   : > { %847 = vmatprep.mubr.msk.f32.mxu0 %vm944_vm0, %v943_v1  ;;  %888 = vmatprep.subr.mxu0 %v943_v1 }
  0x1e   : > { %857 = vmatmul.mubr.msk.f32.gmra.mxu1 %vm300_vm1, %v288_v13  ;;  %889 = vmatpush3.msra.mxu0 %v571_v16 }
  0x1f   : > { %867 = vmatprep.mubr.msk.f32.mxu1 %vm944_vm0, %v943_v1  ;;  %866 = vmatpush3.msra.mxu1 %v429_v15  ;;  %v787_v15 = vld [vmem:[%s1155_s6] ss:$0 sm:$0xff] }
  0x20   : > { %848 = vmatmul.mubr.msk.f32.gmra.mxu0 %vm300_vm1, %v285_v14  ;;  %890 = vmatprep.subr.mxu0 %v943_v1 }
  0x21   : > { %896 = vmatprep.mubr.msk.f32.mxu0 %vm944_vm0, %v943_v1  ;;  %891 = vmatpush3.msra.mxu0 %v570_v17 }
  0x22   : > { %892 = vmatprep.subr.mxu0 %v943_v1 }
  0x23   : > { %893 = vmatpush3.msra.mxu0 %v569_v18 }
  0x24   : > { %894 = vmatprep.subr.mxu0 %v943_v1 }
  0x25   : > { %895 = vmatpush3.msra.mxu0 %v568_v48 }
  0xd4   : > { %v388_v20 = vpop.f32.mrf.mxu0 }
  0xd5   : > { %v389_v21 = vadd.f32 %v771_v19, %v388_v20 }
  0xd6   : > { %v840_v22 = vpop.f32.mrf.mxu0  ;;  %v408_v23 = vpop.f32.mrf.mxu1 }
  0xd7   : > { %v422_v24 = vmax.f32 %v389_v21, 0.0  ;;  %v409_v40 = vadd.f32 %v771_v19, %v408_v23 }
  0xd8   : > { %v393_v25 = vpop.f32.mrf.mxu0  ;;  %v852_v26 = vpop.f32.mrf.mxu1 }
  0xd9   : > { %v394_v27 = vadd.f32 %v771_v19, %v393_v25  ;;  %868 = vmatmul.mubr.msk.f32.vlgmr.msra.gmra.mxu1 %vm300_vm1, %v422_v24  ;;  %v426_v43 = vmax.f32 %v409_v40, 0.0 }
  0xda   : > { %v843_v28 = vpop.f32.mrf.mxu0  ;;  %870 = vmatprep.mubr.msk.f32.mxu1 %vm944_vm0, %v943_v1  ;;  %v413_v29 = vpop.f32.mrf.mxu1 }
  0xdb   : > { %v423_v30 = vmax.f32 %v394_v27, 0.0  ;;  %v414_v44 = vadd.f32 %v771_v19, %v413_v29 }
  0xdc   : > { %v398_v31 = vpop.f32.mrf.mxu0  ;;  %v855_v32 = vpop.f32.mrf.mxu1 }
  0xdd   : > { %v399_v33 = vadd.f32 %v771_v19, %v398_v31  ;;  %871 = vmatmul.mubr.msk.f32.gmra.mxu1 %vm300_vm1, %v423_v30  ;;  %v427_v45 = vmax.f32 %v414_v44, 0.0 }
  0xde   : > { %v846_v34 = vpop.f32.mrf.mxu0  ;;  %873 = vmatprep.mubr.msk.f32.mxu1 %vm944_vm0, %v943_v1  ;;  %v418_v35 = vpop.f32.mrf.mxu1 }
  0xdf   : > { %v424_v36 = vmax.f32 %v399_v33, 0.0  ;;  %v419_v46 = vadd.f32 %v771_v19, %v418_v35 }
  0xe0   : > { %v403_v37 = vpop.f32.mrf.mxu0  ;;  %v858_v38 = vpop.f32.mrf.mxu1 }
  0xe1   : > { %v404_v39 = vadd.f32 %v771_v19, %v403_v37  ;;  %874 = vmatmul.mubr.msk.f32.gmra.mxu1 %vm300_vm1, %v424_v36  ;;  %v428_v47 = vmax.f32 %v419_v46, 0.0 }
  0xe2   : > { %v849_v41 = vpop.f32.mrf.mxu0  ;;  %876 = vmatprep.mubr.msk.f32.mxu1 %vm944_vm0, %v943_v1 }
  0xe3   : > { %v425_v42 = vmax.f32 %v404_v39, 0.0 }
  0xe5   : > { %877 = vmatmul.mubr.msk.f32.gmra.mxu1 %vm300_vm1, %v425_v42 }
  0xe6   : > { %879 = vmatprep.mubr.msk.f32.mxu1 %vm944_vm0, %v943_v1 }
  0xe9   : > { %880 = vmatmul.mubr.msk.f32.gmra.mxu1 %vm300_vm1, %v426_v43 }
  0xea   : > { %882 = vmatprep.mubr.msk.f32.mxu1 %vm944_vm0, %v943_v1 }
  0xed   : > { %883 = vmatmul.mubr.msk.f32.gmra.mxu1 %vm300_vm1, %v427_v45 }
  0xee   : > { %885 = vmatprep.mubr.msk.f32.mxu1 %vm944_vm0, %v943_v1 }
  0xf1   : > { %886 = vmatmul.mubr.msk.f32.gmra.mxu1 %vm300_vm1, %v428_v47 }
 0x199   : > { %v527_v50 = vpop.f32.mrf.mxu1 }
 0x19a   : > { %v528_v51 = vadd.f32 %v779_v49, %v527_v50 }
 0x19b   : > { %v869_v52 = vpop.f32.mrf.mxu1 }
 0x19c   : > { %v561_v53 = vmax.f32 %v528_v51, 0.0 }
 0x19d   : > { %v532_v54 = vpop.f32.mrf.mxu1 }
 0x19e   : > { %v533_v55 = vadd.f32 %v779_v49, %v532_v54  ;;  %897 = vmatmul.mubr.msk.f32.vlgmr.msra.gmra.mxu0 %vm300_vm1, %v561_v53 }
 0x19f   : > { %v872_v56 = vpop.f32.mrf.mxu1  ;;  %899 = vmatprep.mubr.msk.f32.mxu0 %vm944_vm0, %v943_v1 }
 0x1a0   : > { %v562_v57 = vmax.f32 %v533_v55, 0.0 }
 0x1a1   : > { %v537_v58 = vpop.f32.mrf.mxu1 }
 0x1a2   : > { %v538_v59 = vadd.f32 %v779_v49, %v537_v58  ;;  %900 = vmatmul.mubr.msk.f32.gmra.mxu0 %vm300_vm1, %v562_v57 }
 0x1a3   : > { %v875_v60 = vpop.f32.mrf.mxu1  ;;  %902 = vmatprep.mubr.msk.f32.mxu0 %vm944_vm0, %v943_v1 }
 0x1a4   : > { %v563_v61 = vmax.f32 %v538_v59, 0.0 }
 0x1a5   : > { %v542_v62 = vpop.f32.mrf.mxu1 }
 0x1a6   : > { %v543_v63 = vadd.f32 %v779_v49, %v542_v62  ;;  %903 = vmatmul.mubr.msk.f32.gmra.mxu0 %vm300_vm1, %v563_v61 }
 0x1a7   : > { %v878_v0 = vpop.f32.mrf.mxu1  ;;  %905 = vmatprep.mubr.msk.f32.mxu0 %vm944_vm0, %v943_v1 }
 0x1a8   : > { %v564_v2 = vmax.f32 %v543_v63, 0.0 }
 0x1a9   : > { %v547_v3 = vpop.f32.mrf.mxu1 }
 0x1aa   : > { %v548_v4 = vadd.f32 %v779_v49, %v547_v3  ;;  %906 = vmatmul.mubr.msk.f32.gmra.mxu0 %vm300_vm1, %v564_v2 }
 0x1ab   : > { %v881_v5 = vpop.f32.mrf.mxu1  ;;  %908 = vmatprep.mubr.msk.f32.mxu0 %vm944_vm0, %v943_v1 }
 0x1ac   : > { %v565_v6 = vmax.f32 %v548_v4, 0.0 }
 0x1ad   : > { %v552_v7 = vpop.f32.mrf.mxu1 }
 0x1ae   : > { %v553_v8 = vadd.f32 %v779_v49, %v552_v7  ;;  %909 = vmatmul.mubr.msk.f32.gmra.mxu0 %vm300_vm1, %v565_v6 }
 0x1af   : > { %v884_v9 = vpop.f32.mrf.mxu1  ;;  %911 = vmatprep.mubr.msk.f32.mxu0 %vm944_vm0, %v943_v1 }
 0x1b0   : > { %v566_v10 = vmax.f32 %v553_v8, 0.0 }
 0x1b1   : > { %v557_v11 = vpop.f32.mrf.mxu1 }
 0x1b2   : > { %v558_v12 = vadd.f32 %v779_v49, %v557_v11  ;;  %912 = vmatmul.mubr.msk.f32.gmra.mxu0 %vm300_vm1, %v566_v10 }
 0x1b3   : > { %v887_v13 = vpop.f32.mrf.mxu1  ;;  %914 = vmatprep.mubr.msk.f32.mxu0 %vm944_vm0, %v943_v1 }
 0x1b4   : > { %v567_v14 = vmax.f32 %v558_v12, 0.0 }
 0x1b6   : > { %915 = vmatmul.mubr.msk.f32.gmra.mxu0 %vm300_vm1, %v567_v14 }
 0x25e   : > { %v666_v16 = vpop.f32.mrf.mxu0 }
 0x25f   : > { %v667_v17 = vadd.f32 %v787_v15, %v666_v16 }
 0x260   : > { %v898_v18 = vpop.f32.mrf.mxu0 }
 0x261   : > { %701 = vst.msk [vmem:[%s280_s20] sm:$0xff] %vm700_vm2, %v667_v17 }
 0x262   : > { %v671_v19 = vpop.f32.mrf.mxu0 }
 0x263   : > { %v672_v1 = vadd.f32 %v787_v15, %v671_v19 }
 0x264   : > { %v901_v20 = vpop.f32.mrf.mxu0 }
 0x265   : > { %702 = vst.msk [vmem:[%s280_s20 + $0x8] sm:$0xff] %vm700_vm2, %v672_v1 }
 0x266   : > { %v676_v21 = vpop.f32.mrf.mxu0 }
 0x267   : > { %v677_v22 = vadd.f32 %v787_v15, %v676_v21 }
 0x268   : > { %v904_v23 = vpop.f32.mrf.mxu0 }
 0x269   : > { %703 = vst.msk [vmem:[%s280_s20 + $0x10] sm:$0xff] %vm700_vm2, %v677_v22 }
 0x26a   : > { %v681_v24 = vpop.f32.mrf.mxu0 }
 0x26b   : > { %v682_v25 = vadd.f32 %v787_v15, %v681_v24 }
 0x26c   : > { %v907_v26 = vpop.f32.mrf.mxu0 }
 0x26d   : > { %704 = vst.msk [vmem:[%s280_s20 + $0x18] sm:$0xff] %vm700_vm2, %v682_v25 }
 0x26e   : > { %v686_v27 = vpop.f32.mrf.mxu0 }
 0x26f   : > { %v687_v28 = vadd.f32 %v787_v15, %v686_v27 }
 0x270   : > { %v910_v29 = vpop.f32.mrf.mxu0 }
 0x271   : > { %705 = vst.msk [vmem:[%s280_s20 + $0x20] sm:$0xff] %vm700_vm2, %v687_v28 }
 0x272   : > { %v691_v30 = vpop.f32.mrf.mxu0 }
 0x273   : > { %v692_v31 = vadd.f32 %v787_v15, %v691_v30 }
 0x274   : > { %v913_v32 = vpop.f32.mrf.mxu0 }
 0x275   : > { %706 = vst.msk [vmem:[%s280_s20 + $0x28] sm:$0xff] %vm700_vm2, %v692_v31 }
 0x276   : > { %v696_v33 = vpop.f32.mrf.mxu0 }
 0x277   : > { %v697_v34 = vadd.f32 %v787_v15, %v696_v33 }
 0x278   : > { %v916_v35 = vpop.f32.mrf.mxu0 }
 0x279   : > { %707 = vst.msk [vmem:[%s280_s20 + $0x30] sm:$0xff] %vm700_vm2, %v697_v34 }
 0x27a PF: > { %s17_s24 = sadd.s32 1, %s941_s24  }
 0x27b   : > { %p14_p4 = scmp.ge.s32.totalorder %s17_s24, 6  }
 0x27d   :  { %16 = sbr.rel (!%p14_p4) target bundleno = 1 (0x1), region = 78 }

</bundles_post_ra>
